<compile_context>
chip_gen: v7x
topology: tpu7x:2x2x1
jax: 0.10.0
libtpu: 0.0.40
codegen_flags: <defaults>
</compile_context>

<pallas_src>
import jax
import jax.numpy as jnp
from jax import lax
from jax.experimental import pallas as pl
from jax.experimental.pallas import tpu as pltpu


_BLOCK_BUDGET_BYTES = 4 * 1024 * 1024   # per input block (Pallas double-buffers it)
_LANE = 128
_SLAB = 8                                # sublanes streamed per inner-loop step


def _round_up(a, b):
    return -(-a // b) * b


def _sublane(dtype):
    return {4: 8, 2: 16, 1: 32}.get(jnp.dtype(dtype).itemsize, 8)


def _vmem_limit_bytes():
    """Per-generation VMEM limit: <= half of physical VMEM (v7x: 32 of 64 MiB;
    v5e/v6e: 64 of 128 MiB, above their 16/32 MiB scoped defaults)."""
    try:
        cap = int(pltpu.get_tpu_info().vmem_capacity_bytes)
    except Exception:
        cap = 64 * 1024 * 1024           # assume the smallest generation (v7x)
    return max(16 * 1024 * 1024, min(cap // 2, 64 * 1024 * 1024))


def _pick_group(t_total, v):
    """Frame-group factor g (a divisor of T).

    (T, V) is viewed zero-copy as (T//g, g*V) so the lane axis is ~dense even
    when V << 128 (ResGCN uses V = 16..25 joints).  Prefer g*V >= 128, then
    minimal 128-lane padding waste, then the smallest g (cheapest epilogue).
    """
    if v >= _LANE:
        return 1
    best_key, best_g = None, 1
    for g in range(1, t_total + 1):
        if t_total % g:
            continue
        gv = g * v
        if gv > 4 * _LANE:
            break
        padded = _round_up(gv, _LANE)
        key = (gv < _LANE, (padded - gv) / padded, g)
        if best_key is None or key < best_key:
            best_key, best_g = key, g
    return best_g


def _pick_tiles(nc, tg, lane_bytes, sublane, budget):
    """(row block, T block) sizes.

    * bt divides Tg exactly (no padded frames in the running max) and is a
      sublane multiple or the full extent (TPU (8,128) tiling rule).
    * bnc is a sublane multiple sized to the VMEM budget and capped at ~half
      of N*C so the 'parallel' row axis keeps >= 2 blocks (v7x megacore).
      The last row block may be partial: rows are not reduced over, padded
      rows only produce out-of-bounds output rows that Pallas clips.
    """
    valid = [d for d in range(1, tg + 1)
             if tg % d == 0 and (d % sublane == 0 or d == tg)]
    fits = [d for d in valid
            if sublane * _round_up(d, sublane) * lane_bytes <= budget]
    bt = max(fits) if fits else min(valid)

    if nc <= sublane:
        return nc, bt
    bnc = (budget // (_round_up(bt, sublane) * lane_bytes)) // sublane * sublane
    bnc = max(sublane, bnc)
    half = _round_up((nc + 1) // 2, sublane)   # -> at least 2 row blocks
    return min(bnc, half), bt


def _make_kernel(bt, group, v, neg_fill):
    n_slabs, rem = divmod(bt, _SLAB)

    def kernel(x_ref, o_ref, acc_ref):
        # x_ref:   (bnc, bt, g*V) -- native-layout block (rows, frame chunks, lanes)
        # o_ref:   (bnc, V)       -- same block for every T step (VMEM resident)
        # acc_ref: (bnc, g*V)     -- running-max accumulator (scratch)
        t = pl.program_id(1)

        @pl.when(t == 0)
        def _init():
            acc_ref[...] = jnp.full(acc_ref.shape, neg_fill, acc_ref.dtype)

        # Stream 8-sublane slabs into the accumulator: bounded live ranges,
        # no multi-MiB temporary for a whole-block reduce.
        if n_slabs > 0:
            def body(j, carry):
                s = pl.multiple_of(j * _SLAB, _SLAB)
                slab = x_ref[:, pl.ds(s, _SLAB), :]
                acc_ref[...] = jnp.maximum(acc_ref[...], jnp.max(slab, axis=1))
                return carry
            lax.fori_loop(0, n_slabs, body, 0, unroll=n_slabs <= 8)
        if rem > 0:
            slab = x_ref[:, pl.ds(n_slabs * _SLAB, rem), :]
            acc_ref[...] = jnp.maximum(acc_ref[...], jnp.max(slab, axis=1))

        # Last T step: fold the g frame-groups packed on the lane axis and
        # emit (bnc, V).  Tiny epilogue, static lane slices only.
        @pl.when(t == pl.num_programs(1) - 1)
        def _finalize():
            acc = acc_ref[...]
            res = acc[:, 0:v]
            for k in range(1, group):
                res = jnp.maximum(res, acc[:, k * v:(k + 1) * v])
            o_ref[...] = res.astype(o_ref.dtype)

    return kernel


def temporal_forward(x, block_budget_bytes=_BLOCK_BUDGET_BYTES):
    """Pallas equivalent of Temporal.forward: max over axis 2 of (N, C, T, V)."""
    n, c, t_total, v = x.shape
    nc = n * c
    dtype = x.dtype
    itemsize = jnp.dtype(dtype).itemsize
    sublane = _sublane(dtype)

    group = _pick_group(t_total, v)
    tg = t_total // group
    gv = group * v
    lane_bytes = _round_up(gv, _LANE) * itemsize   # lane-padded VMEM bytes per (row, t)

    bnc, bt = _pick_tiles(nc, tg, lane_bytes, sublane, block_budget_bytes)
    grid = (pl.cdiv(nc, bnc), tg // bt)

    # Zero-copy view of the native layout (row-major merges/splits only).
    x3 = x.reshape(nc, tg, gv)

    neg_fill = (-jnp.inf if jnp.issubdtype(dtype, jnp.floating)
                else jnp.iinfo(dtype).min)

    out = pl.pallas_call(
        _make_kernel(bt, group, v, neg_fill),
        out_shape=jax.ShapeDtypeStruct((nc, v), dtype),
        grid_spec=pltpu.PrefetchScalarGridSpec(
            num_scalar_prefetch=0,
            grid=grid,
            in_specs=[pl.BlockSpec((bnc, bt, gv), lambda r, s: (r, s, 0))],
            out_specs=pl.BlockSpec((bnc, v), lambda r, s: (r, 0)),
            scratch_shapes=[pltpu.VMEM((bnc, gv), dtype)],
        ),
        compiler_params=pltpu.CompilerParams(
            dimension_semantics=("parallel", "arbitrary"),
            vmem_limit_bytes=_vmem_limit_bytes(),
        ),
        cost_estimate=pl.CostEstimate(
            flops=nc * t_total * v,
            transcendentals=0,
            bytes_accessed=(nc * t_total * v + nc * v) * itemsize,
        ),
    )(x3)

    return out.reshape(n, c, v)


if __name__ == "__main__":
    key = jax.random.PRNGKey(0)

    # Small skeleton-sequence tensor (N, C, T, V) as Temporal.forward sees it.
    N, C, T, V = 2, 4, 16, 16
    x = jax.random.normal(key, (N, C, T, V), dtype=jnp.float32)

    fwd = jax.jit(temporal_forward)

    out = jax.block_until_ready(fwd(x))
    ref = jnp.max(x, axis=2)
    assert out.shape == (N, C, V), out.shape
    assert bool(jnp.all(out == ref)), "Pallas temporal-max mismatch (f32)"

    # bf16 stays bf16 end-to-end (max is exact; exercises sublane=16 tiling).
    xb = x.astype(jnp.bfloat16)
    outb = jax.block_until_ready(fwd(xb))
    assert outb.dtype == jnp.bfloat16
    assert bool(jnp.all(outb == jnp.max(xb, axis=2))), "Pallas temporal-max mismatch (bf16)"

    # Lane-sparse, non-divisible case: V=25 joints, odd T, partial row block.
    x2 = jax.random.normal(jax.random.PRNGKey(1), (5, 4, 30, 25), dtype=jnp.float32)
    out2 = jax.block_until_ready(fwd(x2))
    assert bool(jnp.all(out2 == jnp.max(x2, axis=2))), "Pallas temporal-max mismatch (V=25)"

    # Tiny block budget -> multi-step T accumulation + streamed slab loop path.
    x3 = jax.random.normal(jax.random.PRNGKey(2), (2, 4, 128, 16), dtype=jnp.float32)
    out3 = jax.block_until_ready(temporal_forward(x3, block_budget_bytes=16 * 1024))
    assert bool(jnp.all(out3 == jnp.max(x3, axis=2))), "Pallas temporal-max mismatch (tiled T)"

    print("KERNEL_OK")
</pallas_src>

<mosaic_0001>
module attributes {stable_mosaic.version = 11 : i64} {
  func.func @kernel(%arg0: i32, %arg1: i32, %arg2: memref<8x2x128xf32, #tpu.memory_space<vmem>>, %arg3: memref<8x16xf32, #tpu.memory_space<vmem>>, %arg4: memref<8x128xf32, #tpu.memory_space<vmem>>) attributes {dimension_semantics = [#tpu.dimension_semantics<parallel>, #tpu.dimension_semantics<arbitrary>], iteration_bounds = array<i64: 1, 1>, scalar_prefetch = 0 : i64, scratch_operands = 1 : i64, tpu.core_type = #tpu.core_type<tc>, window_params = [{transform_indices = @transform_0, window_bounds = array<i64: 8, 2, 128>}, {transform_indices = @transform_1, window_bounds = array<i64: 8, 16>}]} {
    %c0_i32 = arith.constant 0 : i32
    %0 = arith.cmpi eq, %arg1, %c0_i32 : i32
    %1 = arith.extui %0 : i1 to i32
    %c0_i32_0 = arith.constant 0 : i32
    %2 = arith.cmpi ne, %1, %c0_i32_0 : i32
    scf.if %2 {
      %cst_9 = arith.constant 0xFF800000 : f32
      %11 = vector.broadcast %cst_9 : f32 to vector<8x128xf32>
      %c0_10 = arith.constant 0 : index
      %c0_11 = arith.constant 0 : index
      %12 = vector.load %arg4[%c0_10, %c0_11] : memref<8x128xf32, #tpu.memory_space<vmem>>, vector<8x128xf32>
      tpu.vector_store %arg4[%c0_10, %c0_11], %11 {strides = array<i32>} : memref<8x128xf32, #tpu.memory_space<vmem>>, vector<8x128xf32>,
    } else {
    }
    %c0 = arith.constant 0 : index
    %c0_1 = arith.constant 0 : index
    %c0_2 = arith.constant 0 : index
    %3 = vector.load %arg2[%c0, %c0_1, %c0_2] : memref<8x2x128xf32, #tpu.memory_space<vmem>>, vector<8x2x128xf32>
    %c0_3 = arith.constant 0 : index
    %c0_4 = arith.constant 0 : index
    %4 = vector.load %arg4[%c0_3, %c0_4] : memref<8x128xf32, #tpu.memory_space<vmem>>, vector<8x128xf32>
    %cst = arith.constant dense<0xFF800000> : vector<8x128xf32>
    %5 = vector.multi_reduction <maximumf>, %3, %cst [1] : vector<8x2x128xf32> to vector<8x128xf32>
    %6 = arith.maximumf %4, %5 : vector<8x128xf32>
    %c0_5 = arith.constant 0 : index
    %c0_6 = arith.constant 0 : index
    %7 = vector.load %arg4[%c0_5, %c0_6] : memref<8x128xf32, #tpu.memory_space<vmem>>, vector<8x128xf32>
    tpu.vector_store %arg4[%c0_5, %c0_6], %6 {strides = array<i32>} : memref<8x128xf32, #tpu.memory_space<vmem>>, vector<8x128xf32>,
    %c0_i32_7 = arith.constant 0 : i32
    %8 = arith.cmpi eq, %arg1, %c0_i32_7 : i32
    %9 = arith.extui %8 : i1 to i32
    %c0_i32_8 = arith.constant 0 : i32
    %10 = arith.cmpi ne, %9, %c0_i32_8 : i32
    scf.if %10 {
      %c0_9 = arith.constant 0 : index
      %c0_10 = arith.constant 0 : index
      %11 = vector.load %arg4[%c0_9, %c0_10] : memref<8x128xf32, #tpu.memory_space<vmem>>, vector<8x128xf32>
      %12 = vector.extract_strided_slice %11 {offsets = [0, 0], sizes = [8, 16], strides = [1, 1]} : vector<8x128xf32> to vector<8x16xf32>
      %13 = vector.extract_strided_slice %11 {offsets = [0, 16], sizes = [8, 16], strides = [1, 1]} : vector<8x128xf32> to vector<8x16xf32>
      %14 = arith.maximumf %12, %13 : vector<8x16xf32>
      %15 = vector.extract_strided_slice %11 {offsets = [0, 32], sizes = [8, 16], strides = [1, 1]} : vector<8x128xf32> to vector<8x16xf32>
      %16 = arith.maximumf %14, %15 : vector<8x16xf32>
      %17 = vector.extract_strided_slice %11 {offsets = [0, 48], sizes = [8, 16], strides = [1, 1]} : vector<8x128xf32> to vector<8x16xf32>
      %18 = arith.maximumf %16, %17 : vector<8x16xf32>
      %19 = vector.extract_strided_slice %11 {offsets = [0, 64], sizes = [8, 16], strides = [1, 1]} : vector<8x128xf32> to vector<8x16xf32>
      %20 = arith.maximumf %18, %19 : vector<8x16xf32>
      %21 = vector.extract_strided_slice %11 {offsets = [0, 80], sizes = [8, 16], strides = [1, 1]} : vector<8x128xf32> to vector<8x16xf32>
      %22 = arith.maximumf %20, %21 : vector<8x16xf32>
      %23 = vector.extract_strided_slice %11 {offsets = [0, 96], sizes = [8, 16], strides = [1, 1]} : vector<8x128xf32> to vector<8x16xf32>
      %24 = arith.maximumf %22, %23 : vector<8x16xf32>
      %25 = vector.extract_strided_slice %11 {offsets = [0, 112], sizes = [8, 16], strides = [1, 1]} : vector<8x128xf32> to vector<8x16xf32>
      %26 = arith.maximumf %24, %25 : vector<8x16xf32>
      %c0_11 = arith.constant 0 : index
      %c0_12 = arith.constant 0 : index
      %27 = vector.load %arg3[%c0_11, %c0_12] : memref<8x16xf32, #tpu.memory_space<vmem>>, vector<8x16xf32>
      tpu.vector_store %arg3[%c0_11, %c0_12], %26 {strides = array<i32>} : memref<8x16xf32, #tpu.memory_space<vmem>>, vector<8x16xf32>,
    } else {
    }
    return
  }
  func.func @transform_0(%arg0: i32, %arg1: i32) -> (i32, i32, i32) {
    %c0_i32 = arith.constant 0 : i32
    %c0_i32_0 = arith.constant 0 : i32
    return %arg0, %arg1, %c0_i32 : i32, i32, i32
  }
  func.func @transform_1(%arg0: i32, %arg1: i32) -> (i32, i32) {
    %c0_i32 = arith.constant 0 : i32
    %c0_i32_0 = arith.constant 0 : i32
    return %arg0, %c0_i32 : i32, i32
  }
}

</mosaic_0001>

<bundles_post_ra>
// kernel: temporal_forward.1
= control target key start
LH: loop header
LB: loop body
LE: loop exit
PB: predicated region body
PF: predicated region fallthrough
CT: control target
= control target key end

     0   :  { %vm23_vm0 = vcmask 1041408   ;;  %vm88_vm1 = vcmask 1041409   ;;  %s241_s0 = inlined_call_operand.vmem [shape: f32[8,2,128], index: 0, kind: input, shape index: {}]   ;;  %s242_s1 = inlined_call_operand.hbm [shape: f32[8,16], index: 1, kind: output, shape index: {}]  }
   0x1   :  { %v14_v0 = vld [vmem:[%s241_s0] sm:$0x3]  ;;  %v15_v1 = vld [vmem:[%s241_s0 + $0x2] sm:$0x3]  ;;  %v16_v2 = vld [vmem:[%s241_s0 + $0x4] sm:$0x3] }
   0x2   :  { %v17_v3 = vld [vmem:[%s241_s0 + $0x6] sm:$0x3]  ;;  %v18_v4 = vld [vmem:[%s241_s0 + $0x8] sm:$0x3]  ;;  %v19_v5 = vld [vmem:[%s241_s0 + $0xa] sm:$0x3] }
   0x3   :  { %v20_v6 = vld [vmem:[%s241_s0 + $0xc] sm:$0x3]  ;;  %v21_v7 = vld [vmem:[%s241_s0 + $0xe] sm:$0x3]  ;;  %v24_v8 = vsel %vm23_vm0, %v14_v0, -inf  ;;  %v31_v9 = vsel %vm23_vm0, %v15_v1, -inf }
   0x4   :  { %v38_v10 = vsel %vm23_vm0, %v16_v2, -inf  ;;  %v45_v11 = vsel %vm23_vm0, %v17_v3, -inf  ;;  %v25_v12 = vrot.slane %v24_v8, 4  ;;  %v32_v13 = vrot.slane %v31_v9, 4 }
   0x5   :  { %v39_v14 = vrot.slane %v38_v10, 4  ;;  %v46_v15 = vrot.slane %v45_v11, 4  ;;  %v52_v16 = vsel %vm23_vm0, %v18_v4, -inf  ;;  %v59_v17 = vsel %vm23_vm0, %v19_v5, -inf }
   0x6   :  { %v66_v18 = vsel %vm23_vm0, %v20_v6, -inf  ;;  %v73_v19 = vsel %vm23_vm0, %v21_v7, -inf  ;;  %v26_v20 = vmax.f32 %v24_v8, %v25_v12  ;;  %v33_v21 = vmax.f32 %v31_v9, %v32_v13 }
   0x7   :  { %v40_v22 = vmax.f32 %v38_v10, %v39_v14  ;;  %v47_v23 = vmax.f32 %v45_v11, %v46_v15 }
   0x8   :  { %6 = vsyncpa [#allocation4], 0  ;;  %v53_v24 = vrot.slane %v52_v16, 4  ;;  %v60_v25 = vrot.slane %v59_v17, 4  ;;  %v67_v26 = vrot.slane %v66_v18, 4  ;;  %v74_v27 = vrot.slane %v73_v19, 4 }
   0x9   :  { %v27_v28 = vrot.slane %v26_v20, 2  ;;  %v34_v29 = vrot.slane %v33_v21, 2  ;;  %v41_v30 = vrot.slane %v40_v22, 2  ;;  %v48_v31 = vrot.slane %v47_v23, 2  ;;  %s186_s0 = smov 112   ;;  %s187_s22 = smov 80  }
   0xa   :  { %v54_v32 = vmax.f32 %v52_v16, %v53_v24  ;;  %v61_v33 = vmax.f32 %v59_v17, %v60_v25  ;;  %v68_v34 = vmax.f32 %v66_v18, %v67_v26  ;;  %v75_v35 = vmax.f32 %v73_v19, %v74_v27  ;;  %s188_s23 = smov 96   ;;  %s189_s24 = smov 64  }
   0xb   :  { %v28_v36 = vmax.f32 %v26_v20, %v27_v28  ;;  %v35_v37 = vmax.f32 %v33_v21, %v34_v29  ;;  %v42_v38 = vmax.f32 %v40_v22, %v41_v30  ;;  %v49_v39 = vmax.f32 %v47_v23, %v48_v31  ;;  %s190_s25 = smov 48   ;;  %s191_s26 = smov 32  }
   0xc   :  { %v55_v40 = vrot.slane %v54_v32, 2  ;;  %v62_v41 = vrot.slane %v61_v33, 2  ;;  %v69_v42 = vrot.slane %v68_v34, 2  ;;  %v76_v43 = vrot.slane %v75_v35, 2  ;;  %s192_s27 = smov 16   ;;  %s193_s28 = smov [#allocation3]  }
   0xd   :  { %v29_v44 = vrot.slane %v28_v36, 1  ;;  %v36_v45 = vrot.slane %v35_v37, 1  ;;  %v43_v46 = vrot.slane %v42_v38, 1  ;;  %v50_v47 = vrot.slane %v49_v39, 1  ;;  %s146_s29 = sshll.u32 %s193_s28, 4  ;;  %s147_s29 = int_to_ptr.vmem [resolvable:$true] %s146_s29 }
   0xe   :  { %v56_v48 = vmax.f32 %v54_v32, %v55_v40  ;;  %v63_v49 = vmax.f32 %v61_v33, %v62_v41  ;;  %v70_v50 = vmax.f32 %v68_v34, %v69_v42  ;;  %v77_v51 = vmax.f32 %v75_v35, %v76_v43  ;;  %s162_s30 = scalar_lea.vmem %s147_s29, 128  ;;  %p167_p1 = scmp.lt.s32.totalorder %s147_s29, %s147_s29 }
   0xf   :  { %v30_v52 = vmax.f32 %v28_v36, %v29_v44  ;;  %v37_v53 = vmax.f32 %v35_v37, %v36_v45  ;;  %v44_v54 = vmax.f32 %v42_v38, %v43_v46  ;;  %v51_v55 = vmax.f32 %v49_v39, %v50_v47  ;;  %p163_p0 = scmp.ne.s32.totalorder %s147_s29, %s162_s30  ;;  %p168_p2 = scmp.lt.s32.totalorder %s162_s30, %s162_s30 }
  0x10   :  { %v57_v56 = vrot.slane %v56_v48, 1  ;;  %v64_v57 = vrot.slane %v63_v49, 1  ;;  %v71_v58 = vrot.slane %v70_v50, 1  ;;  %v78_v59 = vrot.slane %v77_v51, 1 }
  0x11   :  { %v89_v60 = vsel %vm88_vm1, %v37_v53, %v30_v52  ;;  %vm90_vm2 = vcmask 1042434   ;;  %vm92_vm3 = vcmask 1043459   ;;  %vm94_vm4 = vcmask 1044484   ;;  %p169_p3 = por %p168_p2, %p167_p1 }
  0x12   :  { %v58_v61 = vmax.f32 %v56_v48, %v57_v56  ;;  %v65_v62 = vmax.f32 %v63_v49, %v64_v57  ;;  %v72_v63 = vmax.f32 %v70_v50, %v71_v58  ;;  %v91_v0 = vsel %vm90_vm2, %v44_v54, %v89_v60 }
  0x13   :  { %vm96_vm5 = vcmask 1045509   ;;  %v79_v1 = vmax.f32 %v77_v51, %v78_v59  ;;  %v93_v2 = vsel %vm92_vm3, %v51_v55, %v91_v0  ;;  %vm98_vm6 = vcmask 1046534   ;;  %p170_p4 = pnand %p169_p3, %p163_p0 }
  0x14   :  { %v95_v3 = vsel %vm94_vm4, %v58_v61, %v93_v2  ;;  %vm100_vm7 = vcmask 1047559   ;;  %vm138_vm8 = vcmask 130048  }
  0x15   :  { %v97_v4 = vsel %vm96_vm5, %v65_v62, %v95_v3 }
  0x16   :  { %v99_v5 = vsel %vm98_vm6, %v72_v63, %v97_v4 }
  0x17   :  { %v101_v6 = vsel %vm100_vm7, %v79_v1, %v99_v5 }
  0x18   :  { %110 = vrot.lane.b32.xlu0 %v101_v6, %s186_s0  ;;  %118 = vrot.lane.b32.xlu1 %v101_v6, %s187_s22 }
  0x1c   :  { %114 = vrot.lane.b32.xlu0 %v101_v6, %s188_s23  ;;  %122 = vrot.lane.b32.xlu1 %v101_v6, %s189_s24 }
  0x20   :  { %126 = vrot.lane.b32.xlu0 %v101_v6, %s190_s25  ;;  %130 = vrot.lane.b32.xlu1 %v101_v6, %s191_s26 }
  0x24   :  { %134 = vrot.lane.b32.xlu0 %v101_v6, %s192_s27 }
  0x8a   :  { %v111_v7 = vpop.permute.xlu0 %110  ;;  %v119_v8 = vpop.permute.xlu1 %118 }
  0x8b   :  { %v113_v9 = vmax.f32 %v101_v6, %v111_v7 }
  0x8e   :  { %v115_v10 = vpop.permute.xlu0 %114  ;;  %v123_v11 = vpop.permute.xlu1 %122 }
  0x8f   :  { %v117_v12 = vmax.f32 %v113_v9, %v115_v10 }
  0x91   :  { %v121_v13 = vmax.f32 %v117_v12, %v119_v8 }
  0x92   :  { %v127_v14 = vpop.permute.xlu0 %126  ;;  %v131_v16 = vpop.permute.xlu1 %130 }
  0x93   :  { %v125_v15 = vmax.f32 %v121_v13, %v123_v11 }
  0x95   :  { %v129_v17 = vmax.f32 %v125_v15, %v127_v14 }
  0x96   :  { %v135_v18 = vpop.permute.xlu0 %134 }
  0x97   :  { %v133_v19 = vmax.f32 %v129_v17, %v131_v16 }
  0x99   :  { %v137_v20 = vmax.f32 %v133_v19, %v135_v18 }
  0x9b   :  { %139 = vst.msk [vmem:[#allocation3] sm:$0xff] %vm138_vm8, %v137_v20 }
  0x9c   :  { %173 = shalt.err (!%p170_p4)
}
  0x9d   :  { %s174_s4 = scalar_lea.hbm %s242_s1, 128 }
  0x9e   :  { %p175_p5 = scmp.ne.s32.totalorder %s242_s1, %s174_s4  ;;  %p178_p6 = scmp.lt.u32.totalorder %s174_s4, %s242_s1 }
  0xa0   :  { %p180_p7 = pnand %p178_p6, %p175_p5 }
  0xa2   :  { %183 = shalt.err (!%p180_p7)
}
  0xa3   :  { %149 = dma.vmem_to_hbm [thread:$0]  %s147_s29, 128, %s242_s1, [#allocation4]  }
  0xa4   :  { %184 = dma.done.wait [#allocation4], 128  }
  0xa5   :  { %185 = vsyncadd [#allocation4], 4294967168 }
  0xa6   :  { %153 = vsyncpa [#allocation4], 1 }

</bundles_post_ra>
